<compile_context>
chip_gen: v7x
topology: tpu7x:2x2x1
jax: 0.10.0
libtpu: 0.0.40
codegen_flags: <defaults>
</compile_context>

<pallas_src>
from functools import partial

import jax
import jax.numpy as jnp
from jax.experimental import pallas as pl
from jax.experimental.pallas import tpu as pltpu


EXPANSION = 4
_VMEM_LIMIT = 48 * 1024 * 1024


# ---------------------------------------------------------------------------
# Small helpers
# ---------------------------------------------------------------------------

def _round_up(x, m):
    return ((x + m - 1) // m) * m


def _pick_tm(M, tm_max=1024):
    """Row tile: as large as possible (v5e/v6e want big tiles) while keeping
    >=2 grid steps so v7x can shard the 'parallel' axis across its 2 TCs."""
    if M <= 8:
        return M
    tm = min(tm_max, max(8, _round_up(pl.cdiv(M, 2), 8)))
    return min(tm, M)


def _probe_buffered_specs():
    """Check whether pipeline_mode=pl.Buffered(1) is supported end-to-end."""
    try:
        const_spec = pl.BlockSpec((8, 128), lambda i: (0, 0),
                                  pipeline_mode=pl.Buffered(1))

        def _copy(x_ref, o_ref):
            o_ref[...] = x_ref[...]

        fn = pl.pallas_call(
            _copy,
            out_shape=jax.ShapeDtypeStruct((8, 128), jnp.float32),
            grid_spec=pltpu.PrefetchScalarGridSpec(
                num_scalar_prefetch=0,
                grid=(2,),
                in_specs=[const_spec],
                out_specs=pl.BlockSpec((8, 128), lambda i: (0, 0))),
        )
        jax.block_until_ready(fn(jnp.zeros((8, 128), jnp.float32)))
        return True
    except Exception:   # fall back to default double-buffering
        return False


_BUFFERED_OK = _probe_buffered_specs()


def _const_spec(shape, index_map):
    """BlockSpec for a grid-invariant operand (weights / BN shift): single
    buffered when supported -> halves its VMEM footprint."""
    if _BUFFERED_OK:
        return pl.BlockSpec(shape, index_map, pipeline_mode=pl.Buffered(1))
    return pl.BlockSpec(shape, index_map)


# ---------------------------------------------------------------------------
# Kernel bodies
# ---------------------------------------------------------------------------

def _gemm_kernel(x_ref, w_ref, b_ref, o_ref, *, relu):
    # y = act(x @ w + b)   (w already carries the BN scale; b = BN shift, f32)
    acc = jnp.dot(x_ref[...], w_ref[...], preferred_element_type=jnp.float32)
    acc = acc + b_ref[...]
    if relu:
        acc = jnp.maximum(acc, 0.0)
    o_ref[...] = acc.astype(o_ref.dtype)


def _gemm_gemm_kernel(x_ref, w_ref, b_ref, x2_ref, w2_ref, b2_ref, o_ref):
    # conv3 + projection shortcut fused: relu((x@w + b) + (x2@w2 + b2))
    acc = jnp.dot(x_ref[...], w_ref[...], preferred_element_type=jnp.float32) + b_ref[...]
    acc = acc + jnp.dot(x2_ref[...], w2_ref[...],
                        preferred_element_type=jnp.float32) + b2_ref[...]
    o_ref[...] = jnp.maximum(acc, 0.0).astype(o_ref.dtype)


def _gemm_residual_kernel(x_ref, w_ref, b_ref, r_ref, o_ref):
    # conv3 + identity shortcut fused: relu(x@w + b + r)
    acc = jnp.dot(x_ref[...], w_ref[...], preferred_element_type=jnp.float32) + b_ref[...]
    acc = acc + r_ref[...].astype(jnp.float32)
    o_ref[...] = jnp.maximum(acc, 0.0).astype(o_ref.dtype)


def _conv2_taps_kernel(y1s_ref, w_ref, b_ref, o_ref, *, s, Ho, Ws):
    """Implicit-im2col 3x3 conv (stride s, pad 1) + BN shift + ReLU.

    y1s_ref: (1, s*s, Hs*Ws, Cin)  space-to-depth'd, zero-padded y1 (bf16)
    w_ref:   (9, Cin, Cout)        per-tap weights, BN scale folded (bf16)
    b_ref:   (1, Cout)             BN shift (f32)
    o_ref:   (1, Ho*Ws, Cout)      "wide" output rows; garbage cols dropped on host
    """
    Mw = Ho * Ws
    acc = None
    for kh in range(3):
        for kw in range(3):
            p = (kh % s) * s + (kw % s)           # parity plane of this tap
            off = (kh // s) * Ws + (kw // s)      # flat offset inside the plane
            tap = y1s_ref[0, p, pl.ds(off, Mw), :]            # (Mw, Cin) bf16
            contrib = jnp.dot(tap, w_ref[kh * 3 + kw],
                              preferred_element_type=jnp.float32)
            acc = contrib if acc is None else acc + contrib
    y = jnp.maximum(acc + b_ref[...], 0.0)
    o_ref[0] = y.astype(o_ref.dtype)


# ---------------------------------------------------------------------------
# pallas_call wrappers
# ---------------------------------------------------------------------------

def _row_gemm_call(kernel, operands, N, out_dtype, tm_max=1024):
    """Row-tiled fused GEMM.  `operands` is an ordered list of (array, kind)
    with kind in {"row", "const"}; "row" operands are (M, Ki) slabs tiled over
    the row grid, "const" operands are grid-invariant (weights / BN shifts)."""
    M = next(a.shape[0] for a, kind in operands if kind == "row")
    tm = _pick_tm(M, tm_max)
    grid = (pl.cdiv(M, tm),)

    in_specs, args = [], []
    for a, kind in operands:
        if kind == "row":
            assert a.shape[0] == M
            in_specs.append(pl.BlockSpec((tm, a.shape[1]), lambda i: (i, 0)))
        else:
            in_specs.append(_const_spec(a.shape, lambda i: (0, 0)))
        args.append(a)

    return pl.pallas_call(
        kernel,
        out_shape=jax.ShapeDtypeStruct((M, N), out_dtype),
        grid_spec=pltpu.PrefetchScalarGridSpec(
            num_scalar_prefetch=0,
            grid=grid,
            in_specs=in_specs,
            out_specs=pl.BlockSpec((tm, N), lambda i: (i, 0)),
        ),
        compiler_params=pltpu.CompilerParams(
            dimension_semantics=("parallel",),
            vmem_limit_bytes=_VMEM_LIMIT,
        ),
    )(*args)


def _conv2_call(y1s, w_taps, shift, *, s, Ho, Ws, out_dtype=jnp.bfloat16):
    B, ss, HsWs, Cin = y1s.shape
    Cout = w_taps.shape[-1]
    Mw = Ho * Ws
    return pl.pallas_call(
        partial(_conv2_taps_kernel, s=s, Ho=Ho, Ws=Ws),
        out_shape=jax.ShapeDtypeStruct((B, Mw, Cout), out_dtype),
        grid_spec=pltpu.PrefetchScalarGridSpec(
            num_scalar_prefetch=0,
            grid=(B,),
            in_specs=[
                pl.BlockSpec((1, ss, HsWs, Cin), lambda b: (b, 0, 0, 0)),
                _const_spec((9, Cin, Cout), lambda b: (0, 0, 0)),
                _const_spec((1, Cout), lambda b: (0, 0)),
            ],
            out_specs=pl.BlockSpec((1, Mw, Cout), lambda b: (b, 0, 0)),
        ),
        compiler_params=pltpu.CompilerParams(
            dimension_semantics=("parallel",),
            vmem_limit_bytes=_VMEM_LIMIT,
        ),
    )(y1s, w_taps, shift)


# ---------------------------------------------------------------------------
# Host-side parameter folding / layout glue
# ---------------------------------------------------------------------------

def fold_bn(p, eps=1e-5):
    scale = p["gamma"] / jnp.sqrt(p["var"] + eps)
    shift = p["beta"] - p["mean"] * scale
    return scale, shift


def _fold_w_1x1(w_oihw, scale, dtype=jnp.bfloat16):
    # (co, ci, 1, 1) -> (ci, co) with the BN scale folded into the columns.
    return (w_oihw[:, :, 0, 0].T * scale[None, :]).astype(dtype)


# ---------------------------------------------------------------------------
# Bottleneck forward
# ---------------------------------------------------------------------------

def bottleneck_forward(x_nchw, params, stride=1):
    """x: (B, C_in, H, W) -> (B, 4*planes, Ho, Wo)."""
    x = jnp.transpose(x_nchw, (0, 2, 3, 1))          # NCHW -> NHWC (layout glue)
    B, H, W, Cin = x.shape
    planes = params["conv1_w"].shape[0]
    Cout = EXPANSION * planes
    s = stride

    # ---- conv1 (1x1) + bn1 + relu : one fused GEMM -------------------------
    s1, b1 = fold_bn(params["bn1"])
    w1 = _fold_w_1x1(params["conv1_w"], s1)
    xb = x.astype(jnp.bfloat16).reshape(B * H * W, Cin)
    y1 = _row_gemm_call(
        partial(_gemm_kernel, relu=True),
        [(xb, "row"),
         (w1, "const"),
         (b1.reshape(1, planes).astype(jnp.float32), "const")],
        planes, jnp.bfloat16)

    # ---- conv2 (3x3, stride, pad=1) + bn2 + relu : implicit im2col ---------
    Ho = (H - 1) // s + 1
    Wo = (W - 1) // s + 1
    dmax = 2 // s                       # max tap offset inside a parity plane
    Hs = Ho + dmax + 1                  # +1 row of slack for the flat-row trick
    Ws = Wo + dmax
    Hp, Wp = s * Hs, s * Ws
    y1p = jnp.pad(y1.reshape(B, H, W, planes),
                  ((0, 0), (1, Hp - H - 1), (1, Wp - W - 1), (0, 0)))
    # space-to-depth: (B, s*Hs, s*Ws, C) -> (B, s*s, Hs*Ws, C); the conv stride
    # becomes a parity-plane index and every tap is a contiguous flat offset.
    y1s = (y1p.reshape(B, Hs, s, Ws, s, planes)
              .transpose(0, 2, 4, 1, 3, 5)
              .reshape(B, s * s, Hs * Ws, planes))
    s2, b2 = fold_bn(params["bn2"])
    w2 = (jnp.transpose(params["conv2_w"], (2, 3, 1, 0)).reshape(9, planes, planes)
          * s2[None, None, :]).astype(jnp.bfloat16)
    y2w = _conv2_call(y1s, w2, b2.reshape(1, planes).astype(jnp.float32),
                      s=s, Ho=Ho, Ws=Ws)
    # drop the (Ws - Wo) garbage columns of the wide row layout
    y2 = y2w.reshape(B, Ho, Ws, planes)[:, :, :Wo, :].reshape(B * Ho * Wo, planes)

    # ---- conv3 (1x1) + bn3 + shortcut + relu : one fused kernel ------------
    s3, b3 = fold_bn(params["bn3"])
    w3 = _fold_w_1x1(params["conv3_w"], s3)
    b3 = b3.reshape(1, Cout).astype(jnp.float32)

    if s != 1 or Cin != Cout:
        ss_, bs_ = fold_bn(params["sc_bn"])
        ws = _fold_w_1x1(params["sc_conv_w"], ss_)
        # Strided 1x1 shortcut input (small).  TODO(synk): could be fed via the
        # kernel's index math to avoid this one host-side strided-slice copy.
        xs = x[:, ::s, ::s, :].astype(jnp.bfloat16).reshape(B * Ho * Wo, Cin)
        out2d = _row_gemm_call(
            _gemm_gemm_kernel,
            [(y2, "row"), (w3, "const"), (b3, "const"),
             (xs, "row"), (ws, "const"),
             (bs_.reshape(1, Cout).astype(jnp.float32), "const")],
            Cout, x_nchw.dtype)
    else:
        xid = x.reshape(B * Ho * Wo, Cout)            # identity shortcut (f32)
        out2d = _row_gemm_call(
            _gemm_residual_kernel,
            [(y2, "row"), (w3, "const"), (b3, "const"), (xid, "row")],
            Cout, x_nchw.dtype)

    out = out2d.reshape(B, Ho, Wo, Cout)
    return jnp.transpose(out, (0, 3, 1, 2))           # NHWC -> NCHW


# ---------------------------------------------------------------------------
# Parameter init + plain-JAX reference
# ---------------------------------------------------------------------------

def init_bottleneck_params(key, in_planes, planes, stride=1, dtype=jnp.float32):
    out_planes = EXPANSION * planes
    ks = jax.random.split(key, 8)

    def conv_w(k, co, ci, kh, kw):
        bound = 1.0 / ((ci * kh * kw) ** 0.5)
        return jax.random.uniform(k, (co, ci, kh, kw), dtype,
                                  minval=-bound, maxval=bound)

    def bn_p(k, c):
        k1, k2, k3, k4 = jax.random.split(k, 4)
        return dict(
            gamma=jax.random.uniform(k1, (c,), dtype, minval=0.5, maxval=1.5),
            beta=0.1 * jax.random.normal(k2, (c,), dtype),
            mean=0.1 * jax.random.normal(k3, (c,), dtype),
            var=jax.random.uniform(k4, (c,), dtype, minval=0.5, maxval=1.5),
        )

    params = dict(
        conv1_w=conv_w(ks[0], planes, in_planes, 1, 1),
        bn1=bn_p(ks[1], planes),
        conv2_w=conv_w(ks[2], planes, planes, 3, 3),
        bn2=bn_p(ks[3], planes),
        conv3_w=conv_w(ks[4], out_planes, planes, 1, 1),
        bn3=bn_p(ks[5], out_planes),
    )
    if stride != 1 or in_planes != out_planes:
        params["sc_conv_w"] = conv_w(ks[6], out_planes, in_planes, 1, 1)
        params["sc_bn"] = bn_p(ks[7], out_planes)
    return params


def bottleneck_ref(x, params, stride, eps=1e-5):
    def bn(t, p):
        scale = p["gamma"] / jnp.sqrt(p["var"] + eps)
        shift = p["beta"] - p["mean"] * scale
        return t * scale[None, :, None, None] + shift[None, :, None, None]

    def conv(t, w, stride=1, padding=0):
        return jax.lax.conv_general_dilated(
            t, w, window_strides=(stride, stride),
            padding=[(padding, padding), (padding, padding)],
            dimension_numbers=("NCHW", "OIHW", "NCHW"))

    out = jax.nn.relu(bn(conv(x, params["conv1_w"]), params["bn1"]))
    out = jax.nn.relu(bn(conv(out, params["conv2_w"], stride=stride, padding=1),
                         params["bn2"]))
    out = bn(conv(out, params["conv3_w"]), params["bn3"])
    Cin = x.shape[1]
    Cout = params["conv3_w"].shape[0]
    if stride != 1 or Cin != Cout:
        sc = bn(conv(x, params["sc_conv_w"], stride=stride), params["sc_bn"])
    else:
        sc = x
    return jax.nn.relu(out + sc)


# ---------------------------------------------------------------------------

if __name__ == "__main__":
    key = jax.random.PRNGKey(0)
    k1, k2, k3, k4 = jax.random.split(key, 4)

    def run_case(name, B, in_planes, planes, H, W, stride, kx, kp):
        x = jax.random.normal(kx, (B, in_planes, H, W), dtype=jnp.float32)
        params = init_bottleneck_params(kp, in_planes, planes, stride)

        y = bottleneck_forward(x, params, stride=stride)
        jax.block_until_ready(y)

        y_ref = bottleneck_ref(x, params, stride)
        Ho = (H - 1) // stride + 1
        Wo = (W - 1) // stride + 1
        assert y.shape == y_ref.shape == (B, EXPANSION * planes, Ho, Wo), \
            (name, y.shape, y_ref.shape)
        err = float(jnp.max(jnp.abs(y - y_ref)))
        # bf16 MXU compute (f32 accumulation) vs f32 reference -> loosened tol.
        assert jnp.allclose(y, y_ref, atol=1e-1, rtol=1e-1), \
            f"{name}: max abs err {err}"
        return err

    # Projection-shortcut path (stride 2) and identity-shortcut path (stride 1).
    run_case("proj_stride2", B=2, in_planes=16, planes=16, H=8, W=8, stride=2,
             kx=k1, kp=k2)
    run_case("identity_stride1", B=2, in_planes=64, planes=16, H=8, W=8, stride=1,
             kx=k3, kp=k4)

    print("KERNEL_OK")
</pallas_src>

<mosaic_0001>
module attributes {stable_mosaic.version = 11 : i64} {
  func.func @_copy(%arg0: i32, %arg1: memref<8x128xf32, #tpu.memory_space<vmem>>, %arg2: memref<8x128xf32, #tpu.memory_space<vmem>>) attributes {dimension_semantics = [#tpu.dimension_semantics<arbitrary>], iteration_bounds = array<i64: 2>, scalar_prefetch = 0 : i64, scratch_operands = 0 : i64, tpu.core_type = #tpu.core_type<tc>, window_params = [{pipeline_mode = #tpu.pipeline_mode<synchronous>, transform_indices = @transform_0, window_bounds = array<i64: 8, 128>}, {pipeline_mode = #tpu.pipeline_mode<synchronous>, transform_indices = @transform_1, window_bounds = array<i64: 8, 128>}]} {
    %c0 = arith.constant 0 : index
    %c0_0 = arith.constant 0 : index
    %0 = vector.load %arg1[%c0, %c0_0] : memref<8x128xf32, #tpu.memory_space<vmem>>, vector<8x128xf32>
    %c0_1 = arith.constant 0 : index
    %c0_2 = arith.constant 0 : index
    %1 = vector.load %arg2[%c0_1, %c0_2] : memref<8x128xf32, #tpu.memory_space<vmem>>, vector<8x128xf32>
    tpu.vector_store %arg2[%c0_1, %c0_2], %0 {strides = array<i32>} : memref<8x128xf32, #tpu.memory_space<vmem>>, vector<8x128xf32>,
    return
  }
  func.func @transform_0(%arg0: i32) -> (i32, i32) {
    %c0_i32 = arith.constant 0 : i32
    %c0_i32_0 = arith.constant 0 : i32
    %c0_i32_1 = arith.constant 0 : i32
    return %c0_i32, %c0_i32_0 : i32, i32
  }
  func.func @transform_1(%arg0: i32) -> (i32, i32) {
    %c0_i32 = arith.constant 0 : i32
    %c0_i32_0 = arith.constant 0 : i32
    %c0_i32_1 = arith.constant 0 : i32
    return %c0_i32, %c0_i32_0 : i32, i32
  }
}

module attributes {stable_mosaic.version = 11 : i64} {
  func.func @_gemm_kernel(%arg0: i32, %arg1: memref<64x16xbf16, #tpu.memory_space<vmem>>, %arg2: memref<16x16xbf16, #tpu.memory_space<vmem>>, %arg3: memref<1x16xf32, #tpu.memory_space<vmem>>, %arg4: memref<64x16xbf16, #tpu.memory_space<vmem>>) attributes {dimension_semantics = [#tpu.dimension_semantics<parallel>], iteration_bounds = array<i64: 2>, scalar_prefetch = 0 : i64, scratch_operands = 0 : i64, tpu.core_type = #tpu.core_type<tc>, window_params = [{transform_indices = @transform_0, window_bounds = array<i64: 64, 16>}, {pipeline_mode = #tpu.pipeline_mode<synchronous>, transform_indices = @transform_1, window_bounds = array<i64: 16, 16>}, {pipeline_mode = #tpu.pipeline_mode<synchronous>, transform_indices = @transform_2, window_bounds = array<i64: 1, 16>}, {transform_indices = @transform_3, window_bounds = array<i64: 64, 16>}]} {
    %c0 = arith.constant 0 : index
    %c0_0 = arith.constant 0 : index
    %0 = vector.load %arg1[%c0, %c0_0] : memref<64x16xbf16, #tpu.memory_space<vmem>>, vector<64x16xbf16>
    %c0_1 = arith.constant 0 : index
    %c0_2 = arith.constant 0 : index
    %1 = vector.load %arg2[%c0_1, %c0_2] : memref<16x16xbf16, #tpu.memory_space<vmem>>, vector<16x16xbf16>
    %cst = arith.constant dense<0.000000e+00> : vector<64x16xf32>
    %2 = tpu.matmul %0, %1, %cst {dimension_numbers = #tpu.dot_dimension_numbers<[1], [0], [0], [1], [0, 0, 1, 1], [], []>} : vector<64x16xbf16>, vector<16x16xbf16>, vector<64x16xf32> -> vector<64x16xf32>
    %c0_3 = arith.constant 0 : index
    %c0_4 = arith.constant 0 : index
    %3 = vector.load %arg3[%c0_3, %c0_4] : memref<1x16xf32, #tpu.memory_space<vmem>>, vector<1x16xf32>
    %4 = vector.broadcast %3 : vector<1x16xf32> to vector<64x16xf32>
    %5 = arith.addf %2, %4 : vector<64x16xf32>
    %cst_5 = arith.constant 0.000000e+00 : f32
    %6 = vector.broadcast %cst_5 : f32 to vector<64x16xf32>
    %7 = arith.maximumf %5, %6 : vector<64x16xf32>
    %8 = arith.truncf %7 : vector<64x16xf32> to vector<64x16xbf16>
    %c0_6 = arith.constant 0 : index
    %c0_7 = arith.constant 0 : index
    %9 = vector.load %arg4[%c0_6, %c0_7] : memref<64x16xbf16, #tpu.memory_space<vmem>>, vector<64x16xbf16>
    tpu.vector_store %arg4[%c0_6, %c0_7], %8 {strides = array<i32>} : memref<64x16xbf16, #tpu.memory_space<vmem>>, vector<64x16xbf16>,
    return
  }
  func.func @transform_0(%arg0: i32) -> (i32, i32) {
    %c0_i32 = arith.constant 0 : i32
    %c0_i32_0 = arith.constant 0 : i32
    return %arg0, %c0_i32 : i32, i32
  }
  func.func @transform_1(%arg0: i32) -> (i32, i32) {
    %c0_i32 = arith.constant 0 : i32
    %c0_i32_0 = arith.constant 0 : i32
    %c0_i32_1 = arith.constant 0 : i32
    return %c0_i32, %c0_i32_0 : i32, i32
  }
  func.func @transform_2(%arg0: i32) -> (i32, i32) {
    %c0_i32 = arith.constant 0 : i32
    %c0_i32_0 = arith.constant 0 : i32
    %c0_i32_1 = arith.constant 0 : i32
    return %c0_i32, %c0_i32_0 : i32, i32
  }
  func.func @transform_3(%arg0: i32) -> (i32, i32) {
    %c0_i32 = arith.constant 0 : i32
    %c0_i32_0 = arith.constant 0 : i32
    return %arg0, %c0_i32 : i32, i32
  }
}

</mosaic_0001>

<bundles_post_ra>
// kernel: tpu_custom_call.1
= control target key start
LH: loop header
LB: loop body
LE: loop exit
PB: predicated region body
PF: predicated region fallthrough
CT: control target
= control target key end

     0   :  { %6 = vsyncpa [#allocation3], 0  ;;  %s340_s0 = inlined_call_operand.hbm [shape: f32[8,128], index: 0, kind: input, shape index: {}]   ;;  %s341_s1 = inlined_call_operand.hbm [shape: f32[8,128], index: 1, kind: output, shape index: {}]  }
   0x1   :  { %7 = vsyncpa [#allocation4], 0  ;;  %s261_s6 = smov 0  }
   0x2 LB: > { %s144_s7 = sadd.s32 4294967295, %s247_s6   ;;  %p145_p0 = scmp.ge.s32.totalorder %s247_s6, 1  ;;  %s247_s6 = sphi %s261_s6, %s13_s6  }
   0x3   : > { %p60_p1 = scmp.lt.s32.totalorder %s247_s6, 3  ;;  %p275_p3 = scmp.eq.s32.totalorder %s144_s7, 0 }
   0x4   : > { %s249_s10 = smov [#allocation2]   ;;  %s179_s15 = scalar_lea.hbm %s340_s0, 128 }
   0x5   : > { %p269_p2 = pnand %p145_p0, %p60_p1  ;;  %s73_s11 = sshll.u32 %s249_s10, 4  ;;  %s74_s11 = int_to_ptr.vmem [resolvable:$true] %s73_s11 }
   0x6   : > { %s346_s9 = scalar_select %p275_p3, 1, 0 }
   0x7   : > { %s345_s8 = scalar_select %p269_p2, 1, 0 }
   0x8   : > { %p161_p4 = pneg %p269_p2  ;;  %p180_p6 = scmp.ne.s32.totalorder %s340_s0, %s179_s15 }
   0x9   : > { %p186_p10 = scmp.lt.u32.totalorder %s179_s15, %s340_s0 }
   0xa   : > { %p283_p5 = pnand %p275_p3, %p161_p4 }
   0xc   : > { %p181_p7 = pneg %p283_p5 }
   0xe   : > { %p182_p8 = pnand %p181_p7, %p180_p6 }
  0x10   : > { %p183_p9 = pneg %p182_p8 }
  0x12   : > { %p188_p11 = pnand %p186_p10, %p183_p9 }
  0x14   : > { %191 = shalt.err (!%p188_p11)
}
  0x15   : > { %s192_s20 = scalar_lea.vmem %s74_s11, 128  ;;  %p200_p1 = scmp.lt.s32.totalorder %s74_s11, %s74_s11 }
  0x16   : > { %p193_p12 = scmp.ne.s32.totalorder %s74_s11, %s192_s20  ;;  %p201_p4 = scmp.lt.s32.totalorder %s192_s20, %s192_s20 }
  0x18   : > { %p195_p13 = pnand %p193_p12, %p181_p7  ;;  %p202_p3 = por %p201_p4, %p200_p1 }
  0x1a   : > { %p196_p0 = pneg %p195_p13 }
  0x1c   : > { %p203_p2 = pnand %p202_p3, %p196_p0 }
  0x1e   : > { %206 = shalt.err (!%p203_p2)
}
  0x1f   : > { %164 = dma.hbm_to_vmem [thread:$0]  (!%p283_p5), %s340_s0, 128, %s74_s11, [#allocation3]  }
  0x20   : > { %p348_p6 = scmp.ne.s32.totalorder %s345_s8, 0 }
  0x21   : > { %p349_p8 = scmp.ne.s32.totalorder (!%p348_p6), %s346_s9, 0 }
  0x22   : > { %86 = sbr.rel (%p348_p6) target bundleno = 67 (0x43), region = 24 }
  0x29   : > { %238 = dma.done.wait (%p349_p8), [#allocation3], 128  }
  0x2a   : > { %240 = vsyncadd (%p349_p8), [#allocation3], 4294967168  ;;  %s250_s23 = smov [#allocation5]   ;;  %p311_p2 = scmp.eq.s32.totalorder %s144_s7, 1  ;;  %v96_v0 = vld [vmem:[#allocation2] sm:$0xff] }
  0x2b   : > { %s105_s24 = sshll.u32 %s250_s23, 4  ;;  %97 = vst [vmem:[#allocation5] sm:$0xff] %v96_v0  ;;  %s106_s24 = int_to_ptr.vmem [resolvable:$true] %s105_s24 }
  0x2c   : > { %s207_s26 = scalar_lea.vmem %s106_s24, 128  ;;  %p214_p9 = scmp.lt.s32.totalorder %s106_s24, %s106_s24 }
  0x2d   : > { %p208_p3 = scmp.ne.s32.totalorder %s106_s24, %s207_s26  ;;  %p215_p10 = scmp.lt.s32.totalorder %s207_s26, %s207_s26 }
  0x2f   : > { %p209_p5 = pnand %p208_p3, %p311_p2  ;;  %p216_p11 = por %p215_p10, %p214_p9 }
  0x31   : > { %p210_p7 = pneg %p209_p5 }
  0x33   : > { %p217_p12 = pnand %p216_p11, %p210_p7 }
  0x35   : > { %220 = shalt.err (!%p217_p12)
}
  0x36   : > { %s221_s29 = scalar_lea.hbm %s341_s1, 128 }
  0x37   : > { %p222_p13 = scmp.ne.s32.totalorder %s341_s1, %s221_s29  ;;  %p227_p4 = scmp.lt.u32.totalorder %s221_s29, %s341_s1 }
  0x39   : > { %p223_p0 = pnand %p222_p13, %p311_p2 }
  0x3b   : > { %p224_p1 = pneg %p223_p0 }
  0x3d   : > { %p229_p6 = pnand %p227_p4, %p224_p1 }
  0x3f   : > { %232 = shalt.err (!%p229_p6)
}
  0x40   : > { %158 = dma.vmem_to_hbm [thread:$0]  (%p311_p2), %s106_s24, 128, %s341_s1, [#allocation4]  }
  0x41   : > { %242 = dma.done.wait (%p311_p2), [#allocation4], 128  }
  0x42   : > { %244 = vsyncadd (%p311_p2), [#allocation4], 4294967168 }
  0x43 PF: > { %s13_s6 = sadd.s32 1, %s247_s6  }
  0x44   : > { %p10_p8 = scmp.ge.s32.totalorder %s13_s6, 4  }
  0x46   :  { %12 = sbr.rel (!%p10_p8) target bundleno = 2 (0x2), region = 53 }
  0x4d   :  { %118 = vsyncpa [#allocation3], 1 }
  0x4e   :  { %120 = vsyncpa [#allocation3 + $0x1], 1 }
  0x4f   :  { %121 = vsyncpa [#allocation4], 1 }
  0x50   :  { %123 = vsyncpa [#allocation4 + $0x1], 1 }

// kernel: tpu_custom_call.1
= control target key start
LH: loop header
LB: loop body
LE: loop exit
PB: predicated region body
PF: predicated region fallthrough
CT: control target
= control target key end

     0   :  { %s496_s12 = smov 0   ;;  %s527_s0 = inlined_call_operand.vmem [shape: bf16[128,16], index: 0, kind: input, shape index: {}]   ;;  %s528_s1 = inlined_call_operand.vmem [shape: bf16[16,16], index: 1, kind: input, shape index: {}]   ;;  %s529_s2 = inlined_call_operand.vmem [shape: f32[1,16], index: 2, kind: input, shape index: {}]   ;;  %s530_s3 = inlined_call_operand.vmem [shape: bf16[128,16], index: 3, kind: output, shape index: {}]  }
   0x1 LB: > { %s401_s13 = sadd.s32 4294967295, %s474_s12   ;;  %p405_p0 = scmp.ge.s32.totalorder %s474_s12, 1  ;;  %s474_s12 = sphi %s496_s12, %s13_s12  }
   0x2   : > { %p138_p1 = scmp.lt.s32.totalorder %s474_s12, 3 }
   0x4   : > { %p139_p2 = pnand %p405_p0, %p138_p1 }
   0x5   : > { %v463_v0 = vld [vmem:[%s528_s1] sm:$0xff] (!%p139_p2)   ;;  %s406_s16 = sshll.u32 (!%p139_p2), %s401_s13, 3  ;;  %vm218_vm0 = vcmask (!%p139_p2), 130048   ;;  %vm336_vm1 = vcmask (!%p139_p2), 125952  }
   0x6   : > { %142 = sbr.rel (%p139_p2) target bundleno = 240 (0xf0), region = 32  ;;  %p163_p3 = scmp.lt.s32.totalorder (!%p139_p2), %s406_s16, 15  ;;  %443 = vmatprep.subr.bf16.mxu0 (!%p139_p2), %v463_v0  ;;  %453 = vmatprep.subr.bf16.mxu1 (!%p139_p2), %v463_v0  ;;  %v410_v5 = vld [vmem:[%s529_s2] ss:$0 sm:$0xff] (!%p139_p2) }
   0x7   : > { %444 = vmatpush3.bf16.msra.mxu0 (!%p139_p2), %v463_v0  ;;  %454 = vmatpush3.bf16.msra.mxu1 (!%p139_p2), %v463_v0 }
   0xd   : > { %s532_s16 = smov (!%p163_p3, %s406_s16), 15 }
   0xe   : > { %s407_s17 = sshll.u32 %s532_s16, 2 }
   0xf   : > { %s166_s20 = scalar_lea.vmem %s527_s0, %s407_s17  ;;  %s172_s25 = scalar_lea.vmem %s530_s3, %s407_s17 }
  0x10   : > { %v464_v1 = vld [vmem:[%s166_s20] sm:$0xff]   ;;  %v465_v2 = vld [vmem:[%s166_s20 + $0x10] sm:$0xff]   ;;  %v466_v3 = vld [vmem:[%s166_s20 + $0x8] sm:$0xff]  }
  0x11   : > { %445 = vmatprep.mubr.msk.bf16.mxu0 %vm218_vm0, %v464_v1  ;;  %449 = vmatprep.mubr.msk.bf16.mxu1 %vm218_vm0, %v465_v2  ;;  %v467_v4 = vld [vmem:[%s166_s20 + $0x18] sm:$0xff]  }
  0x12   : > { %446 = vmatmul.mubr.msk.bf16.vlgmr.msra.gmra.mrb[0].mxu0 %vm218_vm0, %v466_v3  ;;  %450 = vmatmul.mubr.msk.bf16.vlgmr.msra.gmra.mrb[0].mxu1 %vm218_vm0, %v467_v4 }
  0xe5   : > { %v447_v6 = vpop.f32.mrb[0].mxu0  ;;  %v451_v8 = vpop.f32.mrb[0].mxu1 }
  0xe6   : > { %v274_v7 = vadd.f32 %v447_v6, %v410_v5  ;;  %v265_v9 = vpop.f32.mrb[1].mxu0  ;;  %v290_v10 = vadd.f32 %v451_v8, %v410_v5  ;;  %v281_v12 = vpop.f32.mrb[1].mxu1 }
  0xe7   : > { %v266_v11 = vadd.f32 %v410_v5, %v265_v9  ;;  %v448_v13 = vpop.f32.mrb[2].mxu0  ;;  %v282_v15 = vadd.f32 %v410_v5, %v281_v12  ;;  %v452_v17 = vpop.f32.mrb[2].mxu1 }
  0xe8   : > { %v298_v14 = vmax.f32 %v274_v7, 0.0  ;;  %v277_v16 = vadd.f32 %v448_v13, %v410_v5  ;;  %v268_v18 = vpop.f32.mrb[3].mxu0  ;;  %v302_v19 = vmax.f32 %v290_v10, 0.0  ;;  %v293_v21 = vadd.f32 %v452_v17, %v410_v5  ;;  %v284_v23 = vpop.f32.mrb[3].mxu1 }
  0xe9   : > { %v296_v20 = vmax.f32 %v266_v11, 0.0  ;;  %v269_v22 = vadd.f32 %v410_v5, %v268_v18  ;;  %v300_v25 = vmax.f32 %v282_v15, 0.0  ;;  %v285_v27 = vadd.f32 %v410_v5, %v284_v23 }
  0xea   : > { %v432_v24 = vpack.c.bf16 %v298_v14, %v298_v14  ;;  %v299_v26 = vmax.f32 %v277_v16, 0.0  ;;  %v436_v28 = vpack.c.bf16 %v302_v19, %v302_v19  ;;  %v303_v30 = vmax.f32 %v293_v21, 0.0 }
  0xeb   : > { %v430_v29 = vpack.c.bf16 %v296_v20, %v296_v20  ;;  %v297_v31 = vmax.f32 %v269_v22, 0.0  ;;  %v434_v32 = vpack.c.bf16 %v300_v25, %v300_v25  ;;  %v301_v34 = vmax.f32 %v285_v27, 0.0 }
  0xec   : > { %339 = vst.msk [vmem:[%s172_s25 + $0x8] sm:$0xf] %vm336_vm1, %v432_v24  ;;  %v433_v33 = vpack.c.bf16 %v299_v26, %v299_v26  ;;  %343 = vst.msk [vmem:[%s172_s25 + $0x18] sm:$0xf] %vm336_vm1, %v436_v28  ;;  %v437_v35 = vpack.c.bf16 %v303_v30, %v303_v30 }
  0xed   : > { %337 = vst.msk [vmem:[%s172_s25] sm:$0xf] %vm336_vm1, %v430_v29  ;;  %v431_v36 = vpack.c.bf16 %v297_v31, %v297_v31  ;;  %341 = vst.msk [vmem:[%s172_s25 + $0x10] sm:$0xf] %vm336_vm1, %v434_v32  ;;  %v435_v37 = vpack.c.bf16 %v301_v34, %v301_v34 }
  0xee   : > { %340 = vst.msk [vmem:[%s172_s25 + $0xc] sm:$0xf] %vm336_vm1, %v433_v33  ;;  %344 = vst.msk [vmem:[%s172_s25 + $0x1c] sm:$0xf] %vm336_vm1, %v437_v35 }
  0xef   : > { %338 = vst.msk [vmem:[%s172_s25 + $0x4] sm:$0xf] %vm336_vm1, %v431_v36  ;;  %342 = vst.msk [vmem:[%s172_s25 + $0x14] sm:$0xf] %vm336_vm1, %v435_v37 }
  0xf0 PF: > { %s13_s12 = sadd.s32 1, %s474_s12  }
  0xf1   : > { %p10_p4 = scmp.ge.s32.totalorder %s13_s12, 4  }
  0xf3   :  { %12 = sbr.rel (!%p10_p4) target bundleno = 1 (0x1), region = 62 }

</bundles_post_ra>
